<compile_context>
chip_gen: v5e
topology: v5e:2x2
jax: 0.10.0
libtpu: 0.0.40
codegen_flags: <defaults>
</compile_context>

<pallas_src>
import jax
import jax.numpy as jnp
import numpy as np
from jax.experimental import pallas as pl
from jax.experimental.pallas import tpu as pltpu


# ----------------------------------------------------------------------------- kernels
def _upsample_kernel_mxu(wt_ref, bt_ref, x_ref, o_ref):
    """MXU path (large C_in):  o = Wmat^T @ X^T + b, f32 accumulate."""
    acc = jnp.dot(wt_ref[...], x_ref[...], preferred_element_type=jnp.float32)
    o_ref[...] = (acc + bt_ref[...]).astype(o_ref.dtype)


def _upsample_kernel_vpu(wt_ref, bt_ref, x_ref, o_ref):
    """VPU path for tiny C_in: outer-product accumulate, C_in broadcast FMAs
    over the (P, L) tile.  Avoids paying MXU push/pop latency for K=C_in<<128."""
    P, C_in = wt_ref.shape
    L = x_ref.shape[-1]
    acc = jnp.zeros((P, L), jnp.float32)
    for ci in range(C_in):                              # static unroll; C_in is tiny here
        acc = acc + (wt_ref[:, ci:ci + 1].astype(jnp.float32)
                     * x_ref[ci:ci + 1, :].astype(jnp.float32))
    o_ref[...] = (acc + bt_ref[...]).astype(o_ref.dtype)


# ----------------------------------------------------------------------------- tiling
def _choose_rows_per_block(H, W, row_bytes, budget_bytes):
    """Largest number of image rows per grid step such that the lane extent th*W
    is a multiple of 128 (lane-dense stores) and the double-buffered in+out tiles
    fit `budget_bytes`.  th == H (full extent) is always a legal fallback."""
    aligned = [th for th in range(H, 0, -1) if (th * W) % 128 == 0]
    for th in aligned:
        if th * row_bytes <= budget_bytes:
            return th
    if aligned:
        return aligned[-1]      # smallest aligned tile; rely on vmem_limit headroom
    return H                    # full H*W extent is always legal (equals array dim)


# ----------------------------------------------------------------------------- wrapper
def conv_transpose2d_upsample(x_nchw, weight, bias, kernel, stride, *,
                              compute_dtype=None,
                              tile_budget_bytes=8 << 20,      # double-buffered tiles
                              vmem_limit_bytes=48 << 20):     # < v7x 64 MiB physical
    """ConvTranspose2d (padding=0) with stride == kernel.  NCHW in / NCHW out."""
    assert kernel == stride, "Pallas kernel covers the stride==kernel upsample case"
    N, C_in, H, W = x_nchw.shape
    C_in_w, C_out, kH, kW = weight.shape      # PyTorch ConvTranspose2d: (in, out, kH, kW)
    assert C_in_w == C_in and kH == kernel and kW == kernel

    out_dtype = x_nchw.dtype
    cdt = compute_dtype if compute_dtype is not None else x_nchw.dtype
    P = kH * kW * C_out
    HW = H * W

    # Input consumed directly in NCHW: pure reshape, no relayout pass over HBM.
    x_t = x_nchw.reshape(N, C_in, HW).astype(cdt)

    # Weight as (P, C_in) with p = (r*kW + s)*C_out + c, so Y^T[p, hw] gives the
    # value of output pixel (h*kH+r, w*kW+s) in channel c.
    wt = jnp.transpose(weight, (2, 3, 1, 0)).reshape(P, C_in).astype(cdt)
    # Bias broadcast over the (r, s) patch positions; kept in f32 for the epilogue.
    bt = jnp.broadcast_to(bias[None, None, :], (kH, kW, C_out)).reshape(P, 1)
    bt = bt.astype(jnp.float32)

    in_item = jnp.dtype(cdt).itemsize
    out_item = jnp.dtype(out_dtype).itemsize
    row_bytes = 2 * W * (C_in * in_item + P * out_item)       # double-buffered in+out
    th = _choose_rows_per_block(H, W, row_bytes, tile_budget_bytes)
    L = th * W                                                # lanes per grid step
    n_blocks = pl.cdiv(H, th)                                 # ragged tail handled

    kernel_fn = _upsample_kernel_vpu if C_in <= 16 else _upsample_kernel_mxu

    y = pl.pallas_call(
        kernel_fn,
        out_shape=jax.ShapeDtypeStruct((N, P, HW), out_dtype),
        grid_spec=pltpu.PrefetchScalarGridSpec(
            num_scalar_prefetch=0,
            grid=(N, n_blocks),
            in_specs=[
                pl.BlockSpec((P, C_in), lambda n, i: (0, 0)),        # weight (resident)
                pl.BlockSpec((P, 1), lambda n, i: (0, 0)),           # bias (resident)
                pl.BlockSpec((None, C_in, L), lambda n, i: (n, 0, i)),  # NCHW pixels
            ],
            out_specs=pl.BlockSpec((None, P, L), lambda n, i: (n, 0, i)),
        ),
        compiler_params=pltpu.CompilerParams(
            dimension_semantics=("parallel", "parallel"),
            vmem_limit_bytes=vmem_limit_bytes),
    )(wt, bt, x_t)

    # Single assembly pass: fuses patch interleave + NHWC->NCHW (required by the
    # PyTorch contract) into one transpose of the output tensor.
    y = y.reshape(N, kH, kW, C_out, H, W)
    y = jnp.transpose(y, (0, 3, 4, 1, 5, 2))          # (N, C_out, H, kH, W, kW)
    return y.reshape(N, C_out, H * kH, W * kW)


# ----------------------------------------------------------------------------- reference
def _ref_conv_transpose2d(x, w, b, stride):
    """Pure-JAX reference matching torch.nn.ConvTranspose2d (padding=0)."""
    k = w.shape[-1]
    w_t = jnp.flip(w, axis=(-2, -1))              # flip spatially
    w_t = jnp.transpose(w_t, (1, 0, 2, 3))        # -> OIHW
    out = jax.lax.conv_general_dilated(
        x, w_t, window_strides=(1, 1),
        padding=((k - 1, k - 1), (k - 1, k - 1)),
        lhs_dilation=(stride, stride),
        dimension_numbers=("NCHW", "OIHW", "NCHW"))
    return out + b[None, :, None, None]


# ----------------------------------------------------------------------------- test
if __name__ == "__main__":
    key = jax.random.PRNGKey(0)
    k1, k2, k3 = jax.random.split(key, 3)

    # Shapes consistent with Upsample(input_dim=4, output_dim=4, kernel=2, stride=2)
    N, C_in, H, W = 2, 4, 16, 16
    C_out, kernel, stride = 4, 2, 2

    x = jax.random.normal(k1, (N, C_in, H, W), jnp.float32)
    bound = 1.0 / np.sqrt(C_in * kernel * kernel)
    weight = jax.random.uniform(k2, (C_in, C_out, kernel, kernel),
                                jnp.float32, -bound, bound)
    bias = jax.random.uniform(k3, (C_out,), jnp.float32, -bound, bound)

    ref = _ref_conv_transpose2d(x, weight, bias, stride)

    # f32 path — tight tolerance (review: 2e-2 was far too loose for K=4 f32).
    out = conv_transpose2d_upsample(x, weight, bias, kernel, stride)
    out = jax.block_until_ready(out)
    np.testing.assert_allclose(np.asarray(out), np.asarray(ref), rtol=1e-5, atol=1e-5)
    assert out.shape == (N, C_out, H * stride, W * stride)

    # bf16 DMA-path (halves HBM bytes on v6e/v7x); f32 accumulate/epilogue inside.
    out_bf16 = conv_transpose2d_upsample(x, weight, bias, kernel, stride,
                                         compute_dtype=jnp.bfloat16)
    out_bf16 = jax.block_until_ready(out_bf16)
    np.testing.assert_allclose(np.asarray(out_bf16), np.asarray(ref),
                               rtol=5e-2, atol=5e-2)

    print("KERNEL_OK")
</pallas_src>

<mosaic_0001>
module attributes {stable_mosaic.version = 11 : i64} {
  func.func @_upsample_kernel_vpu(%arg0: i32, %arg1: i32, %arg2: memref<16x4xf32, #tpu.memory_space<vmem>>, %arg3: memref<16x1xf32, #tpu.memory_space<vmem>>, %arg4: memref<1x4x256xf32, #tpu.memory_space<vmem>>, %arg5: memref<1x16x256xf32, #tpu.memory_space<vmem>>) attributes {dimension_semantics = [#tpu.dimension_semantics<parallel>, #tpu.dimension_semantics<parallel>], iteration_bounds = array<i64: 2, 1>, scalar_prefetch = 0 : i64, scratch_operands = 0 : i64, tpu.core_type = #tpu.core_type<tc>, window_params = [{pipeline_mode = #tpu.pipeline_mode<synchronous>, transform_indices = @transform_0, window_bounds = array<i64: 16, 4>}, {pipeline_mode = #tpu.pipeline_mode<synchronous>, transform_indices = @transform_1, window_bounds = array<i64: 16, 1>}, {transform_indices = @transform_2, window_bounds = array<i64: 1, 4, 256>}, {transform_indices = @transform_3, window_bounds = array<i64: 1, 16, 256>}]} {
    %cst = arith.constant 0.000000e+00 : f32
    %0 = vector.broadcast %cst : f32 to vector<16x256xf32>
    %c0 = arith.constant 0 : index
    %c0_0 = arith.constant 0 : index
    %1 = vector.load %arg2[%c0, %c0_0] : memref<16x4xf32, #tpu.memory_space<vmem>>, vector<16x1xf32>
    %c0_1 = arith.constant 0 : index
    %c0_2 = arith.constant 0 : index
    %c0_3 = arith.constant 0 : index
    %2 = vector.load %arg4[%c0_1, %c0_2, %c0_3] : memref<1x4x256xf32, #tpu.memory_space<vmem>>, vector<1x1x256xf32>
    %3 = vector.shape_cast %2 : vector<1x1x256xf32> to vector<1x256xf32>
    %4 = vector.broadcast %1 : vector<16x1xf32> to vector<16x256xf32>
    %5 = vector.broadcast %3 : vector<1x256xf32> to vector<16x256xf32>
    %6 = arith.mulf %4, %5 : vector<16x256xf32>
    %7 = arith.addf %0, %6 : vector<16x256xf32>
    %c0_4 = arith.constant 0 : index
    %c1 = arith.constant 1 : index
    %8 = vector.load %arg2[%c0_4, %c1] : memref<16x4xf32, #tpu.memory_space<vmem>>, vector<16x1xf32>
    %c0_5 = arith.constant 0 : index
    %c1_6 = arith.constant 1 : index
    %c0_7 = arith.constant 0 : index
    %9 = vector.load %arg4[%c0_5, %c1_6, %c0_7] : memref<1x4x256xf32, #tpu.memory_space<vmem>>, vector<1x1x256xf32>
    %10 = vector.shape_cast %9 : vector<1x1x256xf32> to vector<1x256xf32>
    %11 = vector.broadcast %8 : vector<16x1xf32> to vector<16x256xf32>
    %12 = vector.broadcast %10 : vector<1x256xf32> to vector<16x256xf32>
    %13 = arith.mulf %11, %12 : vector<16x256xf32>
    %14 = arith.addf %7, %13 : vector<16x256xf32>
    %c0_8 = arith.constant 0 : index
    %c2 = arith.constant 2 : index
    %15 = vector.load %arg2[%c0_8, %c2] : memref<16x4xf32, #tpu.memory_space<vmem>>, vector<16x1xf32>
    %c0_9 = arith.constant 0 : index
    %c2_10 = arith.constant 2 : index
    %c0_11 = arith.constant 0 : index
    %16 = vector.load %arg4[%c0_9, %c2_10, %c0_11] : memref<1x4x256xf32, #tpu.memory_space<vmem>>, vector<1x1x256xf32>
    %17 = vector.shape_cast %16 : vector<1x1x256xf32> to vector<1x256xf32>
    %18 = vector.broadcast %15 : vector<16x1xf32> to vector<16x256xf32>
    %19 = vector.broadcast %17 : vector<1x256xf32> to vector<16x256xf32>
    %20 = arith.mulf %18, %19 : vector<16x256xf32>
    %21 = arith.addf %14, %20 : vector<16x256xf32>
    %c0_12 = arith.constant 0 : index
    %c3 = arith.constant 3 : index
    %22 = vector.load %arg2[%c0_12, %c3] : memref<16x4xf32, #tpu.memory_space<vmem>>, vector<16x1xf32>
    %c0_13 = arith.constant 0 : index
    %c3_14 = arith.constant 3 : index
    %c0_15 = arith.constant 0 : index
    %23 = vector.load %arg4[%c0_13, %c3_14, %c0_15] : memref<1x4x256xf32, #tpu.memory_space<vmem>>, vector<1x1x256xf32>
    %24 = vector.shape_cast %23 : vector<1x1x256xf32> to vector<1x256xf32>
    %25 = vector.broadcast %22 : vector<16x1xf32> to vector<16x256xf32>
    %26 = vector.broadcast %24 : vector<1x256xf32> to vector<16x256xf32>
    %27 = arith.mulf %25, %26 : vector<16x256xf32>
    %28 = arith.addf %21, %27 : vector<16x256xf32>
    %c0_16 = arith.constant 0 : index
    %c0_17 = arith.constant 0 : index
    %29 = vector.load %arg3[%c0_16, %c0_17] : memref<16x1xf32, #tpu.memory_space<vmem>>, vector<16x1xf32>
    %30 = vector.broadcast %29 : vector<16x1xf32> to vector<16x256xf32>
    %31 = arith.addf %28, %30 : vector<16x256xf32>
    %c0_18 = arith.constant 0 : index
    %c0_19 = arith.constant 0 : index
    %c0_20 = arith.constant 0 : index
    %32 = vector.load %arg5[%c0_18, %c0_19, %c0_20] : memref<1x16x256xf32, #tpu.memory_space<vmem>>, vector<1x16x256xf32>
    %33 = vector.shape_cast %32 : vector<1x16x256xf32> to vector<16x256xf32>
    %34 = vector.shape_cast %31 : vector<16x256xf32> to vector<1x16x256xf32>
    tpu.vector_store %arg5[%c0_18, %c0_19, %c0_20], %34 {strides = array<i32>} : memref<1x16x256xf32, #tpu.memory_space<vmem>>, vector<1x16x256xf32>,
    return
  }
  func.func @transform_0(%arg0: i32, %arg1: i32) -> (i32, i32) {
    %c0_i32 = arith.constant 0 : i32
    %c0_i32_0 = arith.constant 0 : i32
    %c0_i32_1 = arith.constant 0 : i32
    return %c0_i32, %c0_i32_0 : i32, i32
  }
  func.func @transform_1(%arg0: i32, %arg1: i32) -> (i32, i32) {
    %c0_i32 = arith.constant 0 : i32
    %c0_i32_0 = arith.constant 0 : i32
    %c0_i32_1 = arith.constant 0 : i32
    return %c0_i32, %c0_i32_0 : i32, i32
  }
  func.func @transform_2(%arg0: i32, %arg1: i32) -> (i32, i32, i32) {
    %c0_i32 = arith.constant 0 : i32
    %c0_i32_0 = arith.constant 0 : i32
    return %arg0, %c0_i32, %arg1 : i32, i32, i32
  }
  func.func @transform_3(%arg0: i32, %arg1: i32) -> (i32, i32, i32) {
    %c0_i32 = arith.constant 0 : i32
    %c0_i32_0 = arith.constant 0 : i32
    return %arg0, %c0_i32, %arg1 : i32, i32, i32
  }
}

</mosaic_0001>

<bundles_post_ra>
// kernel: tpu_custom_call.1
= control target key start
LH: loop header
LB: loop body
LE: loop exit
PB: predicated region body
PF: predicated region fallthrough
CT: control target
= control target key end

     0   :  { %8 = vsyncpa [#allocation3], 0  ;;  %s718_s0 = inlined_call_operand.vmem [shape: f32[16,4], index: 0, kind: input, shape index: {}]   ;;  %s719_s1 = inlined_call_operand.vmem [shape: f32[16,1], index: 1, kind: input, shape index: {}]   ;;  %s720_s2 = inlined_call_operand.vmem [shape: f32[2,4,256], index: 2, kind: input, shape index: {}]   ;;  %s721_s3 = inlined_call_operand.hbm [shape: f32[2,16,256], index: 3, kind: output, shape index: {}]  }
   0x1   :  { %10 = vsyncpa [#allocation3 + $0x1], 0  ;;  %s605_s12 = smov 0   ;;  %s607_s13 = smov 0  }
   0x2   :  { %s609_s14 = smov 0   ;;  %s611_s15 = smov 0  }
   0x3   :  { %s613_s16 = smov 0   ;;  %s615_s17 = smov 0  }
   0x4 LB: > { %s412_s18 = sadd.s32 4294967295, %s577_s17   ;;  %s413_s19 = sadd.s32 4294967294, %s577_s17   ;;  %s577_s17 = sphi %s615_s17, %s16_s17   ;;  %s573_s16 = sphi %s613_s16, %s728_s16   ;;  %s569_s15 = sphi %s611_s15, %s727_s15   ;;  %s565_s14 = sphi %s609_s14, %s726_s14   ;;  %s561_s13 = sphi %s607_s13, %s725_s13   ;;  %s557_s12 = sphi %s605_s12, %s724_s12  }
   0x5   : > { %s28_s20 = sadd.s32 1, %s573_s16  ;;  %s107_s21 = sadd.s32 1, %s565_s14 }
   0x6   : > { %p30_p0 = scmp.ge.s32.totalorder %s28_s20, 2  ;;  %p117_p1 = scmp.ne.s32.totalorder %s565_s14, %s561_s13 }
   0x7   : > { %p118_p2 = scmp.eq.s32.totalorder %s412_s18, 1  ;;  %p123_p3 = scmp.ne.s32.totalorder %s561_s13, %s557_s12 }
   0x8   : > { %s730_s20 = smov (%p30_p0, %s28_s20), 0  ;;  %p124_p5 = scmp.eq.s32.totalorder %s413_s19, 1 }
   0x9   : > { %p645_p4 = por %p118_p2, %p117_p1  ;;  %s102_s23 = ssub.s32 %s573_s16, %s730_s20 }
   0xa   : > { %p416_p6 = scmp.ge.s32.totalorder %s577_s17, 1  ;;  %p105_p7 = scmp.eq.s32.totalorder %s102_s23, 0 }
   0xb   : > { %p652_p8 = por %p124_p5, %p123_p3  ;;  %p161_p9 = scmp.lt.s32.totalorder %s577_s17, 3 }
   0xc   : > { %s658_s25 = scalar_select %p105_p7, %s565_s14, %s107_s21  }
   0xd   : > { %p162_p10 = pnand %p416_p6, %p161_p9 }
   0xe   : > { %p190_p11 = scmp.lt.s32.totalorder (!%p162_p10), %s569_s15, 1  ;;  %s186_s18 = sand.u32 (!%p162_p10), 1, %s561_s13  }
   0xf   : > { %165 = sbr.rel (%p162_p10) target bundleno = 170 (0xaa), region = 32  ;;  %s417_s19 = sshll.u32 (!%p162_p10), %s186_s18, 5 }
  0x10   : > { %s429_s21 = sshll.u32 (!%p162_p10), %s569_s15, 5  ;;  %s188_s28 = scalar_lea.vmem (!%p162_p10), [#allocation2], %s417_s19 }
  0x11   : > { %s329_s27 = scalar_lea.hbm (!%p162_p10), %s721_s3, %s429_s21  ;;  %s316_s30 = scalar_lea.sflag (!%p162_p10), [#allocation3], %s186_s18 }
  0x12   : > { %s332_s29 = sshll.u32 (!%p162_p10), %s329_s27, 4  ;;  %s333_s29 = int_to_ptr.hbm [resolvable:$true] %s332_s29 }
  0x13   : > { %s513_s4 = sshra.s32 (!%p162_p10), %s333_s29, 4  ;;  %s514_s4 = int_to_ptr.hbm [resolvable:$true] %s513_s4 }
  0x14   : > { %v200_v0 = vld [vmem:[%s718_s0] sm:$0xff]  ;;  %v579_v1 = vmov 1   ;;  %v580_v2 = vmov 0   ;;  %v581_v3 = vmov 2   ;;  %v201_v4 = vld [vmem:[%s718_s0 + $0x8] sm:$0xff]  ;;  %v582_v5 = vmov 3   ;;  %p520_p1 = scmp.lt.s32.totalorder %s514_s4, %s721_s3 }
  0x15   : > { %492 = vset.pattern.permute.xlu1 %v579_v1  ;;  %491 = vset.pattern.permute.xlu0 %v580_v2  ;;  %v295_v6 = vld [vmem:[%s719_s1] sm:$0xff]  ;;  %v296_v7 = vld [vmem:[%s719_s1 + $0x8] sm:$0xff]  ;;  %s191_s7 = scalar_select %p190_p11, %s569_s15, 1 }
  0x16   : > { %229 = vperm.xlu1 %492, %v200_v0   ;;  %205 = vperm.xlu0 %491, %v200_v0   ;;  %s330_s15 = sshll.u32 %s188_s28, 4  ;;  %s515_s5 = scalar_lea.hbm %s514_s4, 32  ;;  %s331_s15 = int_to_ptr.vmem [resolvable:$true] %s330_s15 }
  0x17   : > { %493 = vset.pattern.permute.xlu2 %v581_v3  ;;  %s428_s8 = sshll.u32 %s191_s7, 3  ;;  %p516_p12 = scmp.ne.s32.totalorder %s514_s4, %s515_s5 }
  0x18   : > { %252 = vperm.xlu2 %493, %v200_v0   ;;  %s197_s11 = scalar_lea.vmem %s720_s2, %s428_s8  ;;  %s519_s8 = scalar_lea.hbm %s721_s3, 64 }
  0x19   : > { %v420_v11 = vld [vmem:[%s197_s11 + $0x1] ss:$4 sm:$0x3]  ;;  %v202_v12 = vld [vmem:[%s197_s11] ss:$4 sm:$0x3]  ;;  %p517_p13 = pnand %p516_p12, %p645_p4  ;;  %p521_p2 = scmp.lt.s32.totalorder %s519_s8, %s515_s5 }
  0x1a   : > { %v237_v13 = vperm.slane %v420_v11, 0  ;;  %v238_v14 = vperm.slane %v420_v11, 1  ;;  %v214_v15 = vperm.slane %v202_v12, 0  ;;  %v215_v16 = vperm.slane %v202_v12, 1 }
  0x1b   : > { %v421_v17 = vld [vmem:[%s197_s11 + $0x2] ss:$4 sm:$0x3]  ;;  %v422_v27 = vld [vmem:[%s197_s11 + $0x3] ss:$4 sm:$0x3]  ;;  %p518_p0 = pneg %p517_p13  ;;  %p522_p3 = por %p521_p2, %p520_p1 }
  0x1c   : > { %v260_v20 = vperm.slane %v421_v17, 0  ;;  %v261_v21 = vperm.slane %v421_v17, 1  ;;  %v283_v32 = vperm.slane %v422_v27, 0  ;;  %v284_v33 = vperm.slane %v422_v27, 1 }
  0x1d   : > { %p523_p5 = pnand %p522_p3, %p518_p0 }
  0x1e   : > { %233 = vperm.xlu1 %492, %v201_v4   ;;  %210 = vperm.xlu0 %491, %v201_v4  }
  0x20   : > { %256 = vperm.xlu2 %493, %v201_v4  }
  0x26   : > { %495 = vset.pattern.permute.xlu1 %v582_v5  ;;  %494 = vset.pattern.permute.xlu0 %v582_v5 }
  0x27   : > { %279 = vperm.xlu1 %495, %v201_v4   ;;  %275 = vperm.xlu0 %494, %v200_v0  }
  0x28   : > { %496 = vset.pattern.permute.xlu2 %v580_v2 }
  0x29   : > { %299 = vperm.xlu2 %496, %v295_v6  }
  0x2f   : > { %497 = vset.pattern.permute.xlu1 %v580_v2  ;;  %498 = vset.pattern.permute.xlu0 %v580_v2 }
  0x30   : > { %304 = vperm.xlu1 %497, %v296_v7  }
  0x72   : > { %v253_v10 = vpop.permute.xlu2 %252 }
  0x73   : > { %v264_v28 = vmul.f32 %v260_v20, %v253_v10  ;;  %v265_v29 = vmul.f32 %v261_v21, %v253_v10 }
  0x7a   : > { %v257_v26 = vpop.permute.xlu2 %256 }
  0x7b   : > { %v266_v46 = vmul.f32 %v260_v20, %v257_v26  ;;  %v267_v47 = vmul.f32 %v261_v21, %v257_v26 }
  0x83   : > { %v300_v48 = vpop.permute.xlu2 %299 }
  0x88   : > { %v230_v8 = vpop.permute.xlu1 %229  ;;  %v206_v9 = vpop.permute.xlu0 %205 }
  0x89   : > { %v241_v22 = vmul.f32 %v237_v13, %v230_v8  ;;  %v242_v23 = vmul.f32 %v238_v14, %v230_v8  ;;  %v218_v24 = vmul.f32 %v214_v15, %v206_v9  ;;  %v219_v25 = vmul.f32 %v215_v16, %v206_v9 }
  0x8b   : > { %v245_v30 = vadd.f32 %v241_v22, %v218_v24  ;;  %v246_v31 = vadd.f32 %v242_v23, %v219_v25 }
  0x8d   : > { %v268_v40 = vadd.f32 %v264_v28, %v245_v30  ;;  %v269_v41 = vadd.f32 %v265_v29, %v246_v31 }
  0x90   : > { %v234_v18 = vpop.permute.xlu1 %233  ;;  %v211_v19 = vpop.permute.xlu0 %210 }
  0x91   : > { %v243_v34 = vmul.f32 %v237_v13, %v234_v18  ;;  %v244_v35 = vmul.f32 %v238_v14, %v234_v18  ;;  %v220_v36 = vmul.f32 %v214_v15, %v211_v19  ;;  %v221_v37 = vmul.f32 %v215_v16, %v211_v19 }
  0x93   : > { %v247_v44 = vadd.f32 %v243_v34, %v220_v36  ;;  %v248_v45 = vadd.f32 %v244_v35, %v221_v37 }
  0x95   : > { %v270_v55 = vadd.f32 %v266_v46, %v247_v44  ;;  %v271_v56 = vadd.f32 %v267_v47, %v248_v45 }
  0x99   : > { %v280_v38 = vpop.permute.xlu1 %279  ;;  %v276_v39 = vpop.permute.xlu0 %275 }
  0x9a   : > { %v287_v42 = vmul.f32 %v283_v32, %v276_v39  ;;  %v288_v43 = vmul.f32 %v284_v33, %v276_v39  ;;  %v289_v51 = vmul.f32 %v283_v32, %v280_v38  ;;  %v290_v52 = vmul.f32 %v284_v33, %v280_v38 }
  0x9c   : > { %v291_v49 = vadd.f32 %v287_v42, %v268_v40  ;;  %v292_v50 = vadd.f32 %v288_v43, %v269_v41  ;;  %v293_v57 = vadd.f32 %v289_v51, %v270_v55  ;;  %v294_v58 = vadd.f32 %v290_v52, %v271_v56 }
  0x9e   : > { %v307_v53 = vadd.f32 %v300_v48, %v291_v49  ;;  %v308_v54 = vadd.f32 %v300_v48, %v292_v50 }
  0xa0   : > { %311 = vst [vmem:[%s188_s28] sm:$0xff] %v307_v53 }
  0xa1   : > { %312 = vst [vmem:[%s188_s28 + $0x8] sm:$0xff] %v308_v54 }
  0xa2   : > { %v305_v59 = vpop.permute.xlu1 %304 }
  0xa3   : > { %v309_v60 = vadd.f32 %v305_v59, %v293_v57  ;;  %v310_v61 = vadd.f32 %v305_v59, %v294_v58 }
  0xa5   : > { %313 = vst [vmem:[%s188_s28 + $0x10] sm:$0xff] %v309_v60 }
  0xa6   : > { %314 = vst [vmem:[%s188_s28 + $0x18] sm:$0xff] %v310_v61 }
  0xa7   : > { %526 = shalt.err (!%p523_p5)
}
  0xa8   : > { %s583_s11 = smov 256   ;;  %s584_s18 = smov 16  }
  0xa9   : > { %430 = dma.vmem_to_hbm [thread:$0]  (%p645_p4), %s331_s15, 512, %s333_s29, %s316_s30, %s583_s11, %s583_s11, %s584_s18  }
  0xaa PF: > { %p436_p6 = scmp.ge.s32.totalorder %s577_s17, 2  ;;  %s347_s19 = sand.u32 1, %s557_s12  }
  0xab   : > { %s348_s21 = scalar_lea.sflag [#allocation3], %s347_s19 }
  0xac   : > { %p433_p7 = pnand %p436_p6, %p652_p8 }
  0xae   : > { %p434_p9 = pneg %p433_p7 }
  0xb0   : > { %552 = dma.done.wait (%p434_p9), %s348_s21, 512  }
  0xb1   : > { %554 = vsyncadd (%p434_p9), %s348_s21, 4294966784  ;;  %s16_s17 = sadd.s32 1, %s577_s17   ;;  %s724_s12 = smov %s561_s13 }
  0xb2   : > { %p13_p10 = scmp.ge.s32.totalorder %s16_s17, 4   ;;  %s725_s13 = smov %s565_s14 }
  0xb3   : > { %s726_s14 = smov %s658_s25  ;;  %s727_s15 = smov %s573_s16 }
  0xb4   : > { %s728_s16 = smov %s730_s20  ;;  %15 = sbr.rel (!%p13_p10) target bundleno = 4 (0x4), region = 70 }
  0xb9   :  { %354 = vsyncpa [#allocation3], 1 }
  0xba   :  { %356 = vsyncpa [#allocation3 + $0x1], 1 }

</bundles_post_ra>
